<compile_context>
chip_gen: v7x
topology: tpu7x:2x2x1
jax: 0.10.0
libtpu: 0.0.40
codegen_flags: <defaults>
</compile_context>

<pallas_src>
import functools

import jax
import jax.numpy as jnp
from jax.experimental import pallas as pl
from jax.experimental.pallas import tpu as pltpu

DROPOUT_P = 0.3
BN_EPS = 1e-5
_PAD = 128   # lane zero-padding for the in-kernel 3x3 tap shifts (> Wo+1)
_OFFSETS = tuple((dh, dw) for dh in (-1, 0, 1) for dw in (-1, 0, 1))


# ------------------------------ Pallas kernel --------------------------------

def _taps_3x3(src, mask_ref, wo, out_dtype):
    """In-VMEM im2col of a 3x3 / stride-1 / pad-1 stencil.

    `src` is a (C, Mt) tile in channels x flat(n, oh, ow) layout whose tile
    boundaries coincide with image boundaries.  Each tap is a static lane
    shift of a zero-padded copy of `src`, multiplied by its per-tap border
    mask (which also zeroes every position that would cross an image or tile
    boundary).  Returns a list of 9 (C, Mt) arrays in `out_dtype`.
    """
    c, mt = src.shape
    zpad = jnp.zeros((c, _PAD), src.dtype)
    padded = jnp.concatenate([zpad, src, zpad], axis=1)       # (C, Mt + 2*_PAD)
    taps = []
    for t, (dh, dw) in enumerate(_OFFSETS):
        k = dh * wo + dw
        tap = padded[:, _PAD + k:_PAD + k + mt]
        if (dh, dw) != (0, 0):                   # center tap is never masked
            tap = tap * mask_ref[t:t + 1, :]
        taps.append(tap.astype(out_dtype))
    return taps


def _basic_block_kernel(*refs, has_proj, in_kernel_c1, wo, split_taps):
    """Fused BasicBlock forward on one (channels, Mt) tile."""
    if in_kernel_c1:                               # stride == 1
        if has_proj:
            (x_ref, w1_ref, s1_ref, b1_ref, drop_ref,
             wsc_ref, ssc_ref, bsc_ref,
             mask_ref, w2_ref, s2_ref, b2_ref, o_ref) = refs
        else:
            (x_ref, w1_ref, s1_ref, b1_ref, drop_ref,
             mask_ref, w2_ref, s2_ref, b2_ref, o_ref) = refs
    else:                                          # stride > 1 (always a proj)
        (x1_ref, w1_ref, s1_ref, b1_ref, drop_ref,
         xs_ref, wsc_ref, ssc_ref, bsc_ref,
         mask_ref, w2_ref, s2_ref, b2_ref, o_ref) = refs

    # ---- conv1 (bf16 MXU, f32 accumulate) + folded bn1 + relu + dropout -----
    if in_kernel_c1:
        x_f32 = x_ref[...]                                       # (Cin, Mt) f32
        x1 = jnp.concatenate(
            _taps_3x3(x_f32, mask_ref, wo, jnp.bfloat16), axis=0)  # (9*Cin, Mt)
    else:
        x1 = x1_ref[...]                        # (9*Cin, Mt) bf16 (XLA im2col)
    acc1 = jnp.dot(w1_ref[...], x1, preferred_element_type=jnp.float32)
    y1 = jnp.maximum(acc1 * s1_ref[...] + b1_ref[...], 0.0)
    out1 = y1 * drop_ref[...].astype(jnp.float32)      # (C1, Mt) f32, in VMEM

    # ---- shortcut ------------------------------------------------------------
    if has_proj:
        xs = x_f32.astype(jnp.bfloat16) if in_kernel_c1 else xs_ref[...]
        accs = jnp.dot(wsc_ref[...], xs, preferred_element_type=jnp.float32)
        short = accs * ssc_ref[...] + bsc_ref[...]
    else:
        short = x_f32                            # identity shortcut, exact f32

    # ---- conv2 (3x3, stride 1, pad 1) + bn2 + residual add + relu -----------
    taps2 = _taps_3x3(out1, mask_ref, wo, jnp.bfloat16)
    c1 = out1.shape[0]
    if split_taps:
        # Large-C1 / VMEM-limited path (v7x): never materialize the (9*C1, Mt)
        # concat; accumulate 9 per-tap matmuls (K = C1 still fills the MXU).
        acc2 = jnp.zeros(o_ref.shape, jnp.float32)
        for t, tap in enumerate(taps2):
            acc2 = acc2 + jnp.dot(w2_ref[:, t * c1:(t + 1) * c1], tap,
                                  preferred_element_type=jnp.float32)
    else:
        x2 = jnp.concatenate(taps2, axis=0)                   # (9*C1, Mt) bf16
        acc2 = jnp.dot(w2_ref[...], x2, preferred_element_type=jnp.float32)

    o_ref[...] = jnp.maximum(acc2 * s2_ref[...] + b2_ref[...] + short, 0.0)


# -------------------------------- JAX glue ------------------------------------

def _fold_bn(gamma, beta, mean, var, eps=BN_EPS):
    scale = gamma / jnp.sqrt(var + eps)
    shift = beta - mean * scale
    return (scale.reshape(-1, 1).astype(jnp.float32),
            shift.reshape(-1, 1).astype(jnp.float32))


def _conv1_taps_t(x_nchw, stride):
    """XLA-side transposed im2col (9*Cin, N*Ho*Wo).  Used only for stride>1,
    where the strided gather is awkward as pure in-kernel lane shifts."""
    n, c, h, w = x_nchw.shape
    ho = (h + 2 - 3) // stride + 1
    wo = (w + 2 - 3) // stride + 1
    xp = jnp.pad(x_nchw, ((0, 0), (0, 0), (1, 1), (1, 1)))
    cols = []
    for kh in range(3):
        for kw in range(3):
            cols.append(xp[:, :, kh:kh + stride * (ho - 1) + 1:stride,
                               kw:kw + stride * (wo - 1) + 1:stride])
    t = jnp.stack(cols, axis=0)                     # (9, N, C, Ho, Wo)
    t = jnp.transpose(t, (0, 2, 1, 3, 4))           # (9, C, N, Ho, Wo)
    return t.reshape(9 * c, n * ho * wo)


def _tap_masks(n_imgs, ho, wo):
    """Per-tap border-validity masks for ONE tile: (9, n_imgs*ho*wo) f32.
    Identical for every tile (tiles are whole images), so it is loaded once."""
    idx = jnp.arange(n_imgs * ho * wo, dtype=jnp.int32)
    ow = idx % wo
    oh = (idx // wo) % ho
    masks = []
    for dh, dw in _OFFSETS:
        ok = ((oh + dh >= 0) & (oh + dh < ho) &
              (ow + dw >= 0) & (ow + dw < wo))
        masks.append(ok.astype(jnp.float32))
    return jnp.stack(masks, axis=0)


def _choose_images_per_tile(n, howo, max_tile_lanes):
    """Largest image count per tile such that the tile is 128-lane aligned and
    within the lane budget (budget should be derived from the VMEM target:
    ~32-48 MiB on v5e/v6e, about half that on v7x's 64 MiB VMEM)."""
    best = None
    for k in range(1, n + 1):
        if n % k == 0 and (k * howo) % 128 == 0 and k * howo <= max_tile_lanes:
            best = k
    if best is None:
        if (n * howo) % 128 != 0:
            raise ValueError("N*Ho*Wo must be a multiple of 128")
        best = n
    return best


def _make_drop_mask(key, c1, m, training=True):
    """Dropout keep-mask with the 1/(1-p) scale folded in, shipped as bf16
    (half the HBM bytes of an f32 mask)."""
    if not training:
        return jnp.ones((c1, m), jnp.bfloat16)
    keep = jax.random.bernoulli(key, 1.0 - DROPOUT_P, (c1, m))
    return jnp.where(keep, 1.0 / (1.0 - DROPOUT_P), 0.0).astype(jnp.bfloat16)


def init_params(key, in_planes, planes, stride):
    ks = jax.random.split(key, 16)
    p = {
        "conv1_w": jax.random.normal(ks[0], (planes, in_planes, 3, 3), jnp.float32) * 0.1,
        "bn1_gamma": 1.0 + 0.1 * jax.random.normal(ks[1], (planes,), jnp.float32),
        "bn1_beta": 0.1 * jax.random.normal(ks[2], (planes,), jnp.float32),
        "bn1_mean": 0.05 * jax.random.normal(ks[3], (planes,), jnp.float32),
        "bn1_var": jax.random.uniform(ks[4], (planes,), jnp.float32, 0.5, 1.5),
        "conv2_w": jax.random.normal(ks[5], (planes, planes, 3, 3), jnp.float32) * 0.1,
        "bn2_gamma": 1.0 + 0.1 * jax.random.normal(ks[6], (planes,), jnp.float32),
        "bn2_beta": 0.1 * jax.random.normal(ks[7], (planes,), jnp.float32),
        "bn2_mean": 0.05 * jax.random.normal(ks[8], (planes,), jnp.float32),
        "bn2_var": jax.random.uniform(ks[9], (planes,), jnp.float32, 0.5, 1.5),
    }
    if stride != 1 or in_planes != planes:
        p.update({
            "sc_w": jax.random.normal(ks[10], (planes, in_planes, 1, 1), jnp.float32) * 0.1,
            "bnsc_gamma": 1.0 + 0.1 * jax.random.normal(ks[11], (planes,), jnp.float32),
            "bnsc_beta": 0.1 * jax.random.normal(ks[12], (planes,), jnp.float32),
            "bnsc_mean": 0.05 * jax.random.normal(ks[13], (planes,), jnp.float32),
            "bnsc_var": jax.random.uniform(ks[14], (planes,), jnp.float32, 0.5, 1.5),
        })
    return p


def basic_block_forward(x_nchw, params, stride, dropout_key=None, *,
                        training=True, drop_mask=None, max_tile_lanes=8192):
    """Fused Pallas forward of the PyTorch BasicBlock.  Returns NCHW float32."""
    x = x_nchw.astype(jnp.float32)
    n, cin, h, w = x.shape
    c1 = params["conv1_w"].shape[0]                 # planes
    c2 = params["conv2_w"].shape[0]                 # planes (expansion == 1)
    has_proj = "sc_w" in params
    in_kernel_c1 = (stride == 1)
    assert has_proj or stride == 1

    ho = (h + 2 - 3) // stride + 1
    wo = (w + 2 - 3) // stride + 1
    m = n * ho * wo
    howo = ho * wo
    assert wo + 1 <= _PAD, "conv tap shift exceeds lane padding"

    imgs_per_tile = _choose_images_per_tile(n, howo, max_tile_lanes)
    mt = imgs_per_tile * howo
    num_tiles = m // mt

    # Folded BN + flattened weights (bf16 matmul operands, f32 epilogue consts).
    w1_mat = jnp.transpose(params["conv1_w"], (0, 2, 3, 1)).reshape(
        c1, 9 * cin).astype(jnp.bfloat16)
    w2_mat = jnp.transpose(params["conv2_w"], (0, 2, 3, 1)).reshape(
        c2, 9 * c1).astype(jnp.bfloat16)
    s1, b1 = _fold_bn(params["bn1_gamma"], params["bn1_beta"],
                      params["bn1_mean"], params["bn1_var"])
    s2, b2 = _fold_bn(params["bn2_gamma"], params["bn2_beta"],
                      params["bn2_mean"], params["bn2_var"])

    if drop_mask is None:
        drop_mask = _make_drop_mask(dropout_key, c1, m, training)
    mask9 = _tap_masks(imgs_per_tile, ho, wo)        # (9, Mt), loaded once

    tile = lambda rows: pl.BlockSpec((rows, mt), lambda i: (0, i))
    const = lambda r, c: pl.BlockSpec((r, c), lambda i: (0, 0))

    if in_kernel_c1:
        # stride == 1: raw (Cin, M) f32 input; conv1 im2col done in the kernel;
        # the identity shortcut reuses the same resident tile.
        x_t = jnp.transpose(x, (1, 0, 2, 3)).reshape(cin, m)
        inputs = [x_t, w1_mat, s1, b1, drop_mask]
        in_specs = [tile(cin), const(c1, 9 * cin), const(c1, 1), const(c1, 1),
                    tile(c1)]
        if has_proj:                                # 1x1 projection, stride 1
            wsc_mat = params["sc_w"].reshape(c1, cin).astype(jnp.bfloat16)
            ssc, bsc = _fold_bn(params["bnsc_gamma"], params["bnsc_beta"],
                                params["bnsc_mean"], params["bnsc_var"])
            inputs += [wsc_mat, ssc, bsc]
            in_specs += [const(c1, cin), const(c1, 1), const(c1, 1)]
    else:
        # stride > 1 (always a projection shortcut): XLA-side strided im2col.
        x1_t = _conv1_taps_t(x, stride).astype(jnp.bfloat16)
        xs = x[:, :, ::stride, ::stride][:, :, :ho, :wo]
        xs_t = jnp.transpose(xs, (1, 0, 2, 3)).reshape(cin, m).astype(jnp.bfloat16)
        wsc_mat = params["sc_w"].reshape(c1, cin).astype(jnp.bfloat16)
        ssc, bsc = _fold_bn(params["bnsc_gamma"], params["bnsc_beta"],
                            params["bnsc_mean"], params["bnsc_var"])
        inputs = [x1_t, w1_mat, s1, b1, drop_mask, xs_t, wsc_mat, ssc, bsc]
        in_specs = [tile(9 * cin), const(c1, 9 * cin), const(c1, 1),
                    const(c1, 1), tile(c1),
                    tile(cin), const(c1, cin), const(c1, 1), const(c1, 1)]

    inputs += [mask9, w2_mat, s2, b2]
    in_specs += [const(9, mt), const(c2, 9 * c1), const(c2, 1), const(c2, 1)]

    flops = 2 * m * (c1 * 9 * cin + c2 * 9 * c1)
    if has_proj:
        flops += 2 * m * c1 * cin
    bytes_accessed = sum(int(a.size) * a.dtype.itemsize for a in inputs) + c2 * m * 4

    split_taps = c1 >= 128            # skip the 9x concat buffer at large C1
    kernel = functools.partial(_basic_block_kernel, has_proj=has_proj,
                               in_kernel_c1=in_kernel_c1, wo=wo,
                               split_taps=split_taps)

    out_t = pl.pallas_call(
        kernel,
        grid=(num_tiles,),
        in_specs=in_specs,
        out_specs=pl.BlockSpec((c2, mt), lambda i: (0, i)),
        out_shape=jax.ShapeDtypeStruct((c2, m), jnp.float32),
        compiler_params=pltpu.CompilerParams(
            dimension_semantics=("parallel",),       # both TensorCores on v7x
            vmem_limit_bytes=48 * 1024 * 1024),
        cost_estimate=pl.CostEstimate(flops=flops, transcendentals=0,
                                      bytes_accessed=bytes_accessed),
    )(*inputs)

    # (C2, N*Ho*Wo) -> NCHW
    return jnp.transpose(out_t.reshape(c2, n, ho, wo), (1, 0, 2, 3))


# ------------------------- pure-JAX reference (check) -------------------------

def reference_forward(x, params, stride, drop_mask_t):
    """lax.conv reference mirroring the kernel numerics: bf16 conv operands,
    f32 accumulation/epilogue, eval-mode folded BN, same dropout mask."""
    f32, bf16 = jnp.float32, jnp.bfloat16
    x = x.astype(f32)
    n = x.shape[0]
    c1 = params["conv1_w"].shape[0]

    def conv(inp, wgt, s, pad):
        return jax.lax.conv_general_dilated(
            inp.astype(bf16), wgt.astype(bf16), window_strides=(s, s),
            padding=pad, dimension_numbers=("NCHW", "OIHW", "NCHW"),
            preferred_element_type=f32)

    def bn(y, pre):
        g, b, mu, var = (params[pre + "_gamma"], params[pre + "_beta"],
                         params[pre + "_mean"], params[pre + "_var"])
        sc = g / jnp.sqrt(var + BN_EPS)
        return y * sc.reshape(1, -1, 1, 1) + (b - mu * sc).reshape(1, -1, 1, 1)

    out = jnp.maximum(bn(conv(x, params["conv1_w"], stride, ((1, 1), (1, 1))),
                         "bn1"), 0.0)
    ho, wo = out.shape[2], out.shape[3]
    drop = jnp.transpose(drop_mask_t.astype(f32).reshape(c1, n, ho, wo),
                         (1, 0, 2, 3))
    out = out * drop
    y2 = bn(conv(out, params["conv2_w"], 1, ((1, 1), (1, 1))), "bn2")
    if "sc_w" in params:
        sc = bn(conv(x, params["sc_w"], stride, ((0, 0), (0, 0))), "bnsc")
    else:
        sc = x
    return jnp.maximum(y2 + sc, 0.0)


# ---------------------------------- main --------------------------------------

if __name__ == "__main__":
    key = jax.random.PRNGKey(0)
    kx, kp, kd, kx2, kp2, kd2 = jax.random.split(key, 6)

    # --- config 1: projection shortcut (stride=2, in_planes != planes) --------
    in_planes, planes, stride = 4, 8, 2
    x = jax.random.normal(kx, (4, in_planes, 16, 16), jnp.float32)   # NCHW
    params = init_params(kp, in_planes, planes, stride)
    drop = _make_drop_mask(kd, planes, 4 * 8 * 8, training=True)
    out = basic_block_forward(x, params, stride, drop_mask=drop,
                              max_tile_lanes=128)     # forces a 2-step grid
    out = jax.block_until_ready(out)
    ref = reference_forward(x, params, stride, drop)
    assert out.shape == (4, planes, 8, 8), out.shape
    assert bool(jnp.all(jnp.isfinite(out)))
    assert bool(jnp.all(out >= 0.0))                  # final ReLU
    assert bool(jnp.allclose(out, ref, atol=2e-2, rtol=2e-2)), (
        "max|diff|=%g" % float(jnp.max(jnp.abs(out - ref))))

    # --- config 2: identity shortcut (stride=1, in_planes == planes) ----------
    in2, planes2, stride2 = 8, 8, 1
    x2 = jax.random.normal(kx2, (4, in2, 8, 8), jnp.float32)
    params2 = init_params(kp2, in2, planes2, stride2)
    drop2 = _make_drop_mask(kd2, planes2, 4 * 8 * 8, training=True)
    out2 = basic_block_forward(x2, params2, stride2, drop_mask=drop2,
                               max_tile_lanes=128)
    out2 = jax.block_until_ready(out2)
    ref2 = reference_forward(x2, params2, stride2, drop2)
    assert out2.shape == (4, planes2, 8, 8), out2.shape
    assert bool(jnp.all(jnp.isfinite(out2)))
    assert bool(jnp.all(out2 >= 0.0))
    assert bool(jnp.allclose(out2, ref2, atol=2e-2, rtol=2e-2)), (
        "max|diff|=%g" % float(jnp.max(jnp.abs(out2 - ref2))))

    print("KERNEL_OK")
</pallas_src>

<mosaic_0001>
module attributes {stable_mosaic.version = 11 : i64} {
  func.func @_basic_block_kernel(%arg0: i32, %arg1: memref<36x128xbf16, #tpu.memory_space<vmem>>, %arg2: memref<8x36xbf16, #tpu.memory_space<vmem>>, %arg3: memref<8x1xf32, #tpu.memory_space<vmem>>, %arg4: memref<8x1xf32, #tpu.memory_space<vmem>>, %arg5: memref<8x128xbf16, #tpu.memory_space<vmem>>, %arg6: memref<4x128xbf16, #tpu.memory_space<vmem>>, %arg7: memref<8x4xbf16, #tpu.memory_space<vmem>>, %arg8: memref<8x1xf32, #tpu.memory_space<vmem>>, %arg9: memref<8x1xf32, #tpu.memory_space<vmem>>, %arg10: memref<9x128xf32, #tpu.memory_space<vmem>>, %arg11: memref<8x72xbf16, #tpu.memory_space<vmem>>, %arg12: memref<8x1xf32, #tpu.memory_space<vmem>>, %arg13: memref<8x1xf32, #tpu.memory_space<vmem>>, %arg14: memref<8x128xf32, #tpu.memory_space<vmem>>) attributes {dimension_semantics = [#tpu.dimension_semantics<parallel>], iteration_bounds = array<i64: 2>, scalar_prefetch = 0 : i64, scratch_operands = 0 : i64, tpu.core_type = #tpu.core_type<tc>, window_params = [{transform_indices = @transform_0, window_bounds = array<i64: 36, 128>}, {pipeline_mode = #tpu.pipeline_mode<synchronous>, transform_indices = @transform_1, window_bounds = array<i64: 8, 36>}, {pipeline_mode = #tpu.pipeline_mode<synchronous>, transform_indices = @transform_2, window_bounds = array<i64: 8, 1>}, {pipeline_mode = #tpu.pipeline_mode<synchronous>, transform_indices = @transform_3, window_bounds = array<i64: 8, 1>}, {transform_indices = @transform_4, window_bounds = array<i64: 8, 128>}, {transform_indices = @transform_5, window_bounds = array<i64: 4, 128>}, {pipeline_mode = #tpu.pipeline_mode<synchronous>, transform_indices = @transform_6, window_bounds = array<i64: 8, 4>}, {pipeline_mode = #tpu.pipeline_mode<synchronous>, transform_indices = @transform_7, window_bounds = array<i64: 8, 1>}, {pipeline_mode = #tpu.pipeline_mode<synchronous>, transform_indices = @transform_8, window_bounds = array<i64: 8, 1>}, {pipeline_mode = #tpu.pipeline_mode<synchronous>, transform_indices = @transform_9, window_bounds = array<i64: 9, 128>}, {pipeline_mode = #tpu.pipeline_mode<synchronous>, transform_indices = @transform_10, window_bounds = array<i64: 8, 72>}, {pipeline_mode = #tpu.pipeline_mode<synchronous>, transform_indices = @transform_11, window_bounds = array<i64: 8, 1>}, {pipeline_mode = #tpu.pipeline_mode<synchronous>, transform_indices = @transform_12, window_bounds = array<i64: 8, 1>}, {transform_indices = @transform_13, window_bounds = array<i64: 8, 128>}]} {
    %c0 = arith.constant 0 : index
    %c0_0 = arith.constant 0 : index
    %0 = vector.load %arg1[%c0, %c0_0] : memref<36x128xbf16, #tpu.memory_space<vmem>>, vector<36x128xbf16>
    %c0_1 = arith.constant 0 : index
    %c0_2 = arith.constant 0 : index
    %1 = vector.load %arg2[%c0_1, %c0_2] : memref<8x36xbf16, #tpu.memory_space<vmem>>, vector<8x36xbf16>
    %cst = arith.constant dense<0.000000e+00> : vector<8x128xf32>
    %2 = tpu.matmul %1, %0, %cst {dimension_numbers = #tpu.dot_dimension_numbers<[1], [0], [0], [1], [0, 0, 1, 1], [], []>} : vector<8x36xbf16>, vector<36x128xbf16>, vector<8x128xf32> -> vector<8x128xf32>
    %c0_3 = arith.constant 0 : index
    %c0_4 = arith.constant 0 : index
    %3 = vector.load %arg3[%c0_3, %c0_4] : memref<8x1xf32, #tpu.memory_space<vmem>>, vector<8x1xf32>
    %4 = vector.broadcast %3 : vector<8x1xf32> to vector<8x128xf32>
    %5 = arith.mulf %2, %4 : vector<8x128xf32>
    %c0_5 = arith.constant 0 : index
    %c0_6 = arith.constant 0 : index
    %6 = vector.load %arg4[%c0_5, %c0_6] : memref<8x1xf32, #tpu.memory_space<vmem>>, vector<8x1xf32>
    %7 = vector.broadcast %6 : vector<8x1xf32> to vector<8x128xf32>
    %8 = arith.addf %5, %7 : vector<8x128xf32>
    %cst_7 = arith.constant 0.000000e+00 : f32
    %9 = vector.broadcast %cst_7 : f32 to vector<8x128xf32>
    %10 = arith.maximumf %8, %9 : vector<8x128xf32>
    %c0_8 = arith.constant 0 : index
    %c0_9 = arith.constant 0 : index
    %11 = vector.load %arg5[%c0_8, %c0_9] : memref<8x128xbf16, #tpu.memory_space<vmem>>, vector<8x128xbf16>
    %12 = arith.extf %11 : vector<8x128xbf16> to vector<8x128xf32>
    %13 = arith.mulf %10, %12 : vector<8x128xf32>
    %c0_10 = arith.constant 0 : index
    %c0_11 = arith.constant 0 : index
    %14 = vector.load %arg6[%c0_10, %c0_11] : memref<4x128xbf16, #tpu.memory_space<vmem>>, vector<4x128xbf16>
    %c0_12 = arith.constant 0 : index
    %c0_13 = arith.constant 0 : index
    %15 = vector.load %arg7[%c0_12, %c0_13] : memref<8x4xbf16, #tpu.memory_space<vmem>>, vector<8x4xbf16>
    %cst_14 = arith.constant dense<0.000000e+00> : vector<8x128xf32>
    %16 = tpu.matmul %15, %14, %cst_14 {dimension_numbers = #tpu.dot_dimension_numbers<[1], [0], [0], [1], [0, 0, 1, 1], [], []>} : vector<8x4xbf16>, vector<4x128xbf16>, vector<8x128xf32> -> vector<8x128xf32>
    %c0_15 = arith.constant 0 : index
    %c0_16 = arith.constant 0 : index
    %17 = vector.load %arg8[%c0_15, %c0_16] : memref<8x1xf32, #tpu.memory_space<vmem>>, vector<8x1xf32>
    %18 = vector.broadcast %17 : vector<8x1xf32> to vector<8x128xf32>
    %19 = arith.mulf %16, %18 : vector<8x128xf32>
    %c0_17 = arith.constant 0 : index
    %c0_18 = arith.constant 0 : index
    %20 = vector.load %arg9[%c0_17, %c0_18] : memref<8x1xf32, #tpu.memory_space<vmem>>, vector<8x1xf32>
    %21 = vector.broadcast %20 : vector<8x1xf32> to vector<8x128xf32>
    %22 = arith.addf %19, %21 : vector<8x128xf32>
    %cst_19 = arith.constant 0.000000e+00 : f32
    %23 = vector.broadcast %cst_19 : f32 to vector<8x128xf32>
    %24 = tpu.concatenate %23, %13, %23 in 1 : vector<8x128xf32>, vector<8x128xf32>, vector<8x128xf32> -> vector<8x384xf32>
    %25 = vector.extract_strided_slice %24 {offsets = [0, 119], sizes = [8, 128], strides = [1, 1]} : vector<8x384xf32> to vector<8x128xf32>
    %c0_20 = arith.constant 0 : index
    %c0_21 = arith.constant 0 : index
    %26 = vector.load %arg10[%c0_20, %c0_21] : memref<9x128xf32, #tpu.memory_space<vmem>>, vector<1x128xf32>
    %27 = vector.broadcast %26 : vector<1x128xf32> to vector<8x128xf32>
    %28 = arith.mulf %25, %27 : vector<8x128xf32>
    %29 = arith.truncf %28 : vector<8x128xf32> to vector<8x128xbf16>
    %30 = vector.extract_strided_slice %24 {offsets = [0, 120], sizes = [8, 128], strides = [1, 1]} : vector<8x384xf32> to vector<8x128xf32>
    %c1 = arith.constant 1 : index
    %c0_22 = arith.constant 0 : index
    %31 = vector.load %arg10[%c1, %c0_22] : memref<9x128xf32, #tpu.memory_space<vmem>>, vector<1x128xf32>
    %32 = vector.broadcast %31 : vector<1x128xf32> to vector<8x128xf32>
    %33 = arith.mulf %30, %32 : vector<8x128xf32>
    %34 = arith.truncf %33 : vector<8x128xf32> to vector<8x128xbf16>
    %35 = vector.extract_strided_slice %24 {offsets = [0, 121], sizes = [8, 128], strides = [1, 1]} : vector<8x384xf32> to vector<8x128xf32>
    %c2 = arith.constant 2 : index
    %c0_23 = arith.constant 0 : index
    %36 = vector.load %arg10[%c2, %c0_23] : memref<9x128xf32, #tpu.memory_space<vmem>>, vector<1x128xf32>
    %37 = vector.broadcast %36 : vector<1x128xf32> to vector<8x128xf32>
    %38 = arith.mulf %35, %37 : vector<8x128xf32>
    %39 = arith.truncf %38 : vector<8x128xf32> to vector<8x128xbf16>
    %40 = vector.extract_strided_slice %24 {offsets = [0, 127], sizes = [8, 128], strides = [1, 1]} : vector<8x384xf32> to vector<8x128xf32>
    %c3 = arith.constant 3 : index
    %c0_24 = arith.constant 0 : index
    %41 = vector.load %arg10[%c3, %c0_24] : memref<9x128xf32, #tpu.memory_space<vmem>>, vector<1x128xf32>
    %42 = vector.broadcast %41 : vector<1x128xf32> to vector<8x128xf32>
    %43 = arith.mulf %40, %42 : vector<8x128xf32>
    %44 = arith.truncf %43 : vector<8x128xf32> to vector<8x128xbf16>
    %45 = vector.extract_strided_slice %24 {offsets = [0, 128], sizes = [8, 128], strides = [1, 1]} : vector<8x384xf32> to vector<8x128xf32>
    %46 = arith.truncf %45 : vector<8x128xf32> to vector<8x128xbf16>
    %47 = vector.extract_strided_slice %24 {offsets = [0, 129], sizes = [8, 128], strides = [1, 1]} : vector<8x384xf32> to vector<8x128xf32>
    %c5 = arith.constant 5 : index
    %c0_25 = arith.constant 0 : index
    %48 = vector.load %arg10[%c5, %c0_25] : memref<9x128xf32, #tpu.memory_space<vmem>>, vector<1x128xf32>
    %49 = vector.broadcast %48 : vector<1x128xf32> to vector<8x128xf32>
    %50 = arith.mulf %47, %49 : vector<8x128xf32>
    %51 = arith.truncf %50 : vector<8x128xf32> to vector<8x128xbf16>
    %52 = vector.extract_strided_slice %24 {offsets = [0, 135], sizes = [8, 128], strides = [1, 1]} : vector<8x384xf32> to vector<8x128xf32>
    %c6 = arith.constant 6 : index
    %c0_26 = arith.constant 0 : index
    %53 = vector.load %arg10[%c6, %c0_26] : memref<9x128xf32, #tpu.memory_space<vmem>>, vector<1x128xf32>
    %54 = vector.broadcast %53 : vector<1x128xf32> to vector<8x128xf32>
    %55 = arith.mulf %52, %54 : vector<8x128xf32>
    %56 = arith.truncf %55 : vector<8x128xf32> to vector<8x128xbf16>
    %57 = vector.extract_strided_slice %24 {offsets = [0, 136], sizes = [8, 128], strides = [1, 1]} : vector<8x384xf32> to vector<8x128xf32>
    %c7 = arith.constant 7 : index
    %c0_27 = arith.constant 0 : index
    %58 = vector.load %arg10[%c7, %c0_27] : memref<9x128xf32, #tpu.memory_space<vmem>>, vector<1x128xf32>
    %59 = vector.broadcast %58 : vector<1x128xf32> to vector<8x128xf32>
    %60 = arith.mulf %57, %59 : vector<8x128xf32>
    %61 = arith.truncf %60 : vector<8x128xf32> to vector<8x128xbf16>
    %62 = vector.extract_strided_slice %24 {offsets = [0, 137], sizes = [8, 128], strides = [1, 1]} : vector<8x384xf32> to vector<8x128xf32>
    %c8 = arith.constant 8 : index
    %c0_28 = arith.constant 0 : index
    %63 = vector.load %arg10[%c8, %c0_28] : memref<9x128xf32, #tpu.memory_space<vmem>>, vector<1x128xf32>
    %64 = vector.broadcast %63 : vector<1x128xf32> to vector<8x128xf32>
    %65 = arith.mulf %62, %64 : vector<8x128xf32>
    %66 = arith.truncf %65 : vector<8x128xf32> to vector<8x128xbf16>
    %67 = tpu.concatenate %29, %34, %39, %44, %46, %51, %56, %61, %66 in 0 : vector<8x128xbf16>, vector<8x128xbf16>, vector<8x128xbf16>, vector<8x128xbf16>, vector<8x128xbf16>, vector<8x128xbf16>, vector<8x128xbf16>, vector<8x128xbf16>, vector<8x128xbf16> -> vector<72x128xbf16>
    %c0_29 = arith.constant 0 : index
    %c0_30 = arith.constant 0 : index
    %68 = vector.load %arg11[%c0_29, %c0_30] : memref<8x72xbf16, #tpu.memory_space<vmem>>, vector<8x72xbf16>
    %cst_31 = arith.constant dense<0.000000e+00> : vector<8x128xf32>
    %69 = tpu.matmul %68, %67, %cst_31 {dimension_numbers = #tpu.dot_dimension_numbers<[1], [0], [0], [1], [0, 0, 1, 1], [], []>} : vector<8x72xbf16>, vector<72x128xbf16>, vector<8x128xf32> -> vector<8x128xf32>
    %c0_32 = arith.constant 0 : index
    %c0_33 = arith.constant 0 : index
    %70 = vector.load %arg12[%c0_32, %c0_33] : memref<8x1xf32, #tpu.memory_space<vmem>>, vector<8x1xf32>
    %71 = vector.broadcast %70 : vector<8x1xf32> to vector<8x128xf32>
    %72 = arith.mulf %69, %71 : vector<8x128xf32>
    %c0_34 = arith.constant 0 : index
    %c0_35 = arith.constant 0 : index
    %73 = vector.load %arg13[%c0_34, %c0_35] : memref<8x1xf32, #tpu.memory_space<vmem>>, vector<8x1xf32>
    %74 = vector.broadcast %73 : vector<8x1xf32> to vector<8x128xf32>
    %75 = arith.addf %72, %74 : vector<8x128xf32>
    %76 = arith.addf %75, %22 : vector<8x128xf32>
    %cst_36 = arith.constant 0.000000e+00 : f32
    %77 = vector.broadcast %cst_36 : f32 to vector<8x128xf32>
    %78 = arith.maximumf %76, %77 : vector<8x128xf32>
    %c0_37 = arith.constant 0 : index
    %c0_38 = arith.constant 0 : index
    %79 = vector.load %arg14[%c0_37, %c0_38] : memref<8x128xf32, #tpu.memory_space<vmem>>, vector<8x128xf32>
    tpu.vector_store %arg14[%c0_37, %c0_38], %78 {strides = array<i32>} : memref<8x128xf32, #tpu.memory_space<vmem>>, vector<8x128xf32>,
    return
  }
  func.func @transform_0(%arg0: i32) -> (i32, i32) {
    %c0_i32 = arith.constant 0 : i32
    %c0_i32_0 = arith.constant 0 : i32
    return %c0_i32, %arg0 : i32, i32
  }
  func.func @transform_1(%arg0: i32) -> (i32, i32) {
    %c0_i32 = arith.constant 0 : i32
    %c0_i32_0 = arith.constant 0 : i32
    %c0_i32_1 = arith.constant 0 : i32
    return %c0_i32, %c0_i32_0 : i32, i32
  }
  func.func @transform_2(%arg0: i32) -> (i32, i32) {
    %c0_i32 = arith.constant 0 : i32
    %c0_i32_0 = arith.constant 0 : i32
    %c0_i32_1 = arith.constant 0 : i32
    return %c0_i32, %c0_i32_0 : i32, i32
  }
  func.func @transform_3(%arg0: i32) -> (i32, i32) {
    %c0_i32 = arith.constant 0 : i32
    %c0_i32_0 = arith.constant 0 : i32
    %c0_i32_1 = arith.constant 0 : i32
    return %c0_i32, %c0_i32_0 : i32, i32
  }
  func.func @transform_4(%arg0: i32) -> (i32, i32) {
    %c0_i32 = arith.constant 0 : i32
    %c0_i32_0 = arith.constant 0 : i32
    return %c0_i32, %arg0 : i32, i32
  }
  func.func @transform_5(%arg0: i32) -> (i32, i32) {
    %c0_i32 = arith.constant 0 : i32
    %c0_i32_0 = arith.constant 0 : i32
    return %c0_i32, %arg0 : i32, i32
  }
  func.func @transform_6(%arg0: i32) -> (i32, i32) {
    %c0_i32 = arith.constant 0 : i32
    %c0_i32_0 = arith.constant 0 : i32
    %c0_i32_1 = arith.constant 0 : i32
    return %c0_i32, %c0_i32_0 : i32, i32
  }
  func.func @transform_7(%arg0: i32) -> (i32, i32) {
    %c0_i32 = arith.constant 0 : i32
    %c0_i32_0 = arith.constant 0 : i32
    %c0_i32_1 = arith.constant 0 : i32
    return %c0_i32, %c0_i32_0 : i32, i32
  }
  func.func @transform_8(%arg0: i32) -> (i32, i32) {
    %c0_i32 = arith.constant 0 : i32
    %c0_i32_0 = arith.constant 0 : i32
    %c0_i32_1 = arith.constant 0 : i32
    return %c0_i32, %c0_i32_0 : i32, i32
  }
  func.func @transform_9(%arg0: i32) -> (i32, i32) {
    %c0_i32 = arith.constant 0 : i32
    %c0_i32_0 = arith.constant 0 : i32
    %c0_i32_1 = arith.constant 0 : i32
    return %c0_i32, %c0_i32_0 : i32, i32
  }
  func.func @transform_10(%arg0: i32) -> (i32, i32) {
    %c0_i32 = arith.constant 0 : i32
    %c0_i32_0 = arith.constant 0 : i32
    %c0_i32_1 = arith.constant 0 : i32
    return %c0_i32, %c0_i32_0 : i32, i32
  }
  func.func @transform_11(%arg0: i32) -> (i32, i32) {
    %c0_i32 = arith.constant 0 : i32
    %c0_i32_0 = arith.constant 0 : i32
    %c0_i32_1 = arith.constant 0 : i32
    return %c0_i32, %c0_i32_0 : i32, i32
  }
  func.func @transform_12(%arg0: i32) -> (i32, i32) {
    %c0_i32 = arith.constant 0 : i32
    %c0_i32_0 = arith.constant 0 : i32
    %c0_i32_1 = arith.constant 0 : i32
    return %c0_i32, %c0_i32_0 : i32, i32
  }
  func.func @transform_13(%arg0: i32) -> (i32, i32) {
    %c0_i32 = arith.constant 0 : i32
    %c0_i32_0 = arith.constant 0 : i32
    return %c0_i32, %arg0 : i32, i32
  }
}

</mosaic_0001>

<bundles_post_ra>
// kernel: tpu_custom_call.1
= control target key start
LH: loop header
LB: loop body
LE: loop exit
PB: predicated region body
PF: predicated region fallthrough
CT: control target
= control target key end

     0   :  { %18 = vsyncpa [#allocation4], 0  ;;  %s1700_s0 = inlined_call_operand.vmem [shape: bf16[36,256], index: 0, kind: input, shape index: {}]   ;;  %s1701_s1 = inlined_call_operand.hbm [shape: bf16[8,36], index: 1, kind: input, shape index: {}]   ;;  %s1702_s2 = inlined_call_operand.vmem [shape: f32[8,1], index: 2, kind: input, shape index: {}]   ;;  %s1703_s3 = inlined_call_operand.vmem [shape: f32[8,1], index: 3, kind: input, shape index: {}]   ;;  %s1704_s4 = inlined_call_operand.vmem [shape: bf16[8,256], index: 4, kind: input, shape index: {}]   ;;  %s1705_s5 = inlined_call_operand.vmem [shape: bf16[4,256], index: 5, kind: input, shape index: {}]   ;;  %s1706_s6 = inlined_call_operand.vmem [shape: bf16[8,4], index: 6, kind: input, shape index: {}]   ;;  %s1707_s7 = inlined_call_operand.vmem [shape: f32[8,1], index: 7, kind: input, shape index: {}]   ;;  %s1708_s8 = inlined_call_operand.vmem [shape: f32[8,1], index: 8, kind: input, shape index: {}]   ;;  %s1709_s9 = inlined_call_operand.vmem [shape: f32[9,128], index: 9, kind: input, shape index: {}]   ;;  %s1710_s10 = inlined_call_operand.vmem [shape: bf16[8,72], index: 10, kind: input, shape index: {}]   ;;  %s1711_s11 = inlined_call_operand.vmem [shape: f32[8,1], index: 11, kind: input, shape index: {}]   ;;  %s1712_s12 = inlined_call_operand.vmem [shape: f32[8,1], index: 12, kind: input, shape index: {}]   ;;  %s1713_s13 = inlined_call_operand.hbm [shape: f32[8,256], index: 13, kind: output, shape index: {}]  }
   0x1   :  { %19 = vsyncpa [#allocation5], 0 }
   0x2   :  { %21 = vsyncpa [#allocation5 + $0x1], 0  ;;  %s1435_s25 = smov 0   ;;  %s1437_s26 = smov 0  }
   0x3   :  { %s1439_s27 = smov 0   ;;  %s1441_s28 = smov 0  }
   0x4 LB: > { %1723 = sst [smem:[#allocation9_spill]] %s1333_s25  ;;  %s1456_s29 = sadd.s32 4294967295, %s1345_s28   ;;  %s1345_s28 = sphi %s1441_s28, %s1741_s28   ;;  %s1341_s27 = sphi %s1439_s27, %s1745_s27   ;;  %s1337_s26 = sphi %s1437_s26, %s1744_s26   ;;  %s1333_s25 = sphi %s1435_s25, %s1743_s25  }
   0x5   : > { %s1108_s30 = sadd.s32 4294967294, %s1345_s28   ;;  %s1460_s14 = sadd.s32 1, %s1345_s28  }
   0x6   : > { %1724 = sst [smem:[#allocation10_spill]] %s1460_s14  ;;  %s34_s15 = sadd.s32 1, %s1341_s27 }
   0x7   : > { %s31_s16 = ssub.s32 %s1345_s28, %s1460_s14  ;;  %p41_p0 = scmp.ne.s32.totalorder %s1341_s27, %s1337_s26 }
   0x8   : > { %p32_p1 = scmp.eq.s32.totalorder %s31_s16, 0  ;;  %p42_p2 = scmp.eq.s32.totalorder %s1345_s28, 0 }
   0x9   : > { %p333_p3 = scmp.eq.s32.totalorder %s1456_s29, 1  ;;  %p338_p4 = scmp.ne.s32.totalorder %s1337_s26, %s1333_s25 }
   0xa   : > { %s1472_s17 = scalar_select %p32_p1, %s1341_s27, %s34_s15  }
   0xb   : > { %p1474_p5 = por %p42_p2, %p41_p0  ;;  %p1478_p6 = por %p333_p3, %p41_p0 }
   0xc   : > { %1725 = sst [smem:[#allocation11_spill]] %s1472_s17  ;;  %p339_p7 = scmp.eq.s32.totalorder %s1108_s30, 1 }
   0xd   : > { %s1726_s18 = scalar_select %p1474_p5, 1, 0 }
   0xe   : > { %s1727_s19 = scalar_select %p1478_p6, 1, 0 }
   0xf   : > { %p1109_p8 = scmp.ge.s32.totalorder %s1345_s28, 1  ;;  %p346_p9 = scmp.lt.s32.totalorder %s1345_s28, 3 }
  0x10   : > { %p1484_p10 = por %p339_p7, %p338_p4  ;;  %p1718_p11 = scmp.eq.s32.totalorder %s1456_s29, 0 }
  0x11   : > { %p1489_p12 = pnand %p1109_p8, %p346_p9  ;;  %s1347_s22 = smov [#allocation3]  }
  0x12   : > { %s1728_s20 = scalar_select %p1484_p10, 1, 0 }
  0x13   : > { %s1730_s21 = scalar_select %p1489_p12, 1, 0 }
  0x14   : > { %1729 = sst [smem:[#allocation12_spill]] %s1728_s20  ;;  %s359_s23 = sshll.u32 %s1347_s22, 4  ;;  %s360_s23 = int_to_ptr.vmem [resolvable:$true] %s359_s23 }
  0x15   : > { %p1186_p13 = pneg %p1489_p12  ;;  %s1251_s16 = scalar_lea.hbm %s1701_s1, 64 }
  0x16   : > { %p1252_p1 = scmp.ne.s32.totalorder %s1701_s1, %s1251_s16  ;;  %p1258_p7 = scmp.lt.u32.totalorder %s1251_s16, %s1701_s1 }
  0x17   : > { %p1497_p0 = pnand %p1718_p11, %p1186_p13 }
  0x19   : > { %p1253_p2 = pneg %p1497_p0 }
  0x1b   : > { %p1254_p3 = pnand %p1253_p2, %p1252_p1 }
  0x1d   : > { %p1255_p4 = pneg %p1254_p3 }
  0x1f   : > { %p1260_p8 = pnand %p1258_p7, %p1255_p4 }
  0x21   : > { %1263 = shalt.err (!%p1260_p8)
}
  0x22   : > { %s1264_s25 = scalar_lea.vmem %s360_s23, 64  ;;  %p1272_p10 = scmp.lt.s32.totalorder %s360_s23, %s360_s23 }
  0x23   : > { %p1265_p9 = scmp.ne.s32.totalorder %s360_s23, %s1264_s25  ;;  %p1273_p6 = scmp.lt.s32.totalorder %s1264_s25, %s1264_s25 }
  0x25   : > { %p1267_p13 = pnand %p1265_p9, %p1253_p2  ;;  %p1274_p12 = por %p1273_p6, %p1272_p10 }
  0x27   : > { %p1268_p11 = pneg %p1267_p13 }
  0x29   : > { %p1275_p5 = pnand %p1274_p12, %p1268_p11 }
  0x2b   : > { %1278 = shalt.err (!%p1275_p5)
}
  0x2c   : > { %1189 = dma.hbm_to_vmem [thread:$0]  (!%p1497_p0), %s1701_s1, 64, %s360_s23, [#allocation4]  }
  0x2d   : > { %p1111_p1 = scmp.ge.s32.totalorder %s1345_s28, 2 }
  0x2e   : > { %p1732_p3 = scmp.ne.s32.totalorder (!%p1111_p1), %s1726_s18, 0 }
  0x2f   : > { %393 = sbr.rel (%p1111_p1) target bundleno = 62 (0x3e), region = 56 }
  0x36   : > { %396 = sbr.rel (!%p1732_p3) target bundleno = 62 (0x3e), region = 60  ;;  %s398_s25 = sand.u32 (%p1732_p3), 1, %s1341_s27  }
  0x37   : > { %s1112_s20 = sshll.u32 (%p1732_p3), %s1345_s28, 2  ;;  %s1178_s30 = smul.u32 (%p1732_p3), 20, %s398_s25 }
  0x38   : > { %s402_s24 = scalar_lea.vmem (%p1732_p3), %s1700_s0, %s1112_s20 }
  0x39   : > { %v418_v0 = vld [vmem:[%s402_s24] sm:$0xf] (%p1732_p3)  ;;  %v420_v1 = vld [vmem:[%s402_s24 + $0x8] sm:$0xf] (%p1732_p3)  ;;  %v422_v2 = vld [vmem:[%s402_s24 + $0x10] sm:$0xf] (%p1732_p3) }
  0x3a   : > { %v424_v3 = vld [vmem:[%s402_s24 + $0x18] sm:$0xf] (%p1732_p3)  ;;  %v426_v4 = vld [vmem:[%s402_s24 + $0x20] sm:$0xf] (%p1732_p3)  ;;  %s400_s23 = scalar_lea.vmem (%p1732_p3), [#allocation2], %s1178_s30 }
  0x3b   : > { %419 = vst [vmem:[%s400_s23] sm:$0xf] (%p1732_p3), %v418_v0  ;;  %421 = vst [vmem:[%s400_s23 + $0x4] sm:$0xf] (%p1732_p3), %v420_v1 }
  0x3c   : > { %423 = vst [vmem:[%s400_s23 + $0x8] sm:$0xf] (%p1732_p3), %v422_v2  ;;  %425 = vst [vmem:[%s400_s23 + $0xc] sm:$0xf] (%p1732_p3), %v424_v3 }
  0x3d   : > { %427 = vst [vmem:[%s400_s23 + $0x10] sm:$0xf] %v426_v4 }
  0x3e PF: > { %p1733_p5 = scmp.ne.s32.totalorder %s1730_s21, 0 }
  0x3f   : > { %s1530_s18 = sand.u32 (!%p1733_p5), 1, %s1337_s26   ;;  %p1734_p6 = scmp.eq.s32.totalorder (!%p1733_p5), %s1456_s29, 0 }
  0x40   : > { %477 = sbr.rel (%p1733_p5) target bundleno = 802 (0x322), region = 109 }
  0x41   : > { %s1179_s22 = smul.u32 (!%p1733_p5), 20, %s1530_s18 }
  0x43   : > { %s482_s14 = scalar_lea.vmem (!%p1733_p5), [#allocation2], %s1179_s22 }
  0x47   : > { %1324 = dma.done.wait (%p1734_p6), [#allocation4], 64   ;;  %p1735_p10 = pmov %p1734_p6 }
  0x48   : > { %v1348_v5 = vmov 0.0   ;;  %vm1349_vm0 = vmmov 0   ;;  %v1350_v6 = vmov 0   ;;  %v1248_v7 = vld [vmem:[%s482_s14] sm:$0xff]   ;;  %v1249_v8 = vld [vmem:[%s482_s14 + $0x8] sm:$0xff]   ;;  %vm569_vm1 = vcmask 1041408  }
  0x49   : > { %1326 = vsyncadd (%p1735_p10), [#allocation4], 4294967232  ;;  %1148 = vmatprep.subr.bf16.mxu0 %v1348_v5  ;;  %1154 = vmatprep.mubr.msk.bf16.mxu0 %vm1349_vm0, %v1348_v5  ;;  %v613_v9 = vld [vmem:[%s1702_s2] sm:$0xff]  ;;  %s1721_s16 = smov 120   ;;  %s1352_s21 = smov 127   ;;  %vm565_vm2 = vcmask 293888  }
  0x4a   : > { %1246 = vset.pattern.permute.xlu0 %v1350_v6  ;;  %1164 = vmatprep.subr.bf16.mxu1 %v1348_v5  ;;  %v1250_v10 = vld [vmem:[%s482_s14 + $0x10] ss:$0 sps:$4 sm:$0x33]   ;;  %v1124_v11 = vld [vmem:[%s1709_s9 + $0x1] ss:$0 sm:$0xff]  ;;  %s1353_s20 = smov 121  }
  0x4b   : > { %1174 = vmatprep.mubr.msk.bf16.mxu1 %vm1349_vm0, %v1348_v5  ;;  %1247 = vset.pattern.permute.xlu1 %v1350_v6  ;;  %v620_v12 = vld [vmem:[%s1703_s3] sm:$0xff]  ;;  %v571_v14 = vsel %vm569_vm1, %v1250_v10, 0  ;;  %v549_v17 = vld [vmem:[#allocation3] sm:$0xf]  ;;  %s1354_s30 = smov 1   ;;  %s1355_s14 = smov 8  }
  0x4c   : > { %1149 = vmatpush3.bf16.msra.mxu0 %v1248_v7  ;;  %616 = vperm.xlu0 %1246, %v613_v9   ;;  %v1126_v13 = vld [vmem:[%s1709_s9 + $0x3] ss:$0 sm:$0xff]  ;;  %v1125_v15 = vld [vmem:[%s1709_s9 + $0x2] ss:$0 sm:$0xff]  ;;  %v1127_v16 = vld [vmem:[%s1709_s9 + $0x5] ss:$0 sm:$0xff] }
  0x4d   : > { %1150 = vmatprep.subr.bf16.mxu0 %v1348_v5  ;;  %713 = vrot.lane.b32.xlu1 %v1124_v11, %s1721_s16  ;;  %v1129_v18 = vld [vmem:[%s1709_s9 + $0x7] ss:$0 sm:$0xff]  ;;  %v1128_v19 = vld [vmem:[%s1709_s9 + $0x6] ss:$0 sm:$0xff]  ;;  %s1356_s17 = smov 7   ;;  %s1357_s15 = smov 9  }
  0x4e   : > { %v1130_v20 = vld [vmem:[%s1709_s9 + $0x8] ss:$0 sm:$0xff]  ;;  %v1123_v21 = vld [vmem:[%s1709_s9] ss:$0 sm:$0xff]  ;;  %s1358_s24 = smov 119   ;;  %s1359_s23 = smov 118  }
  0x4f   : > { %s1360_s16 = smov 126   ;;  %s1736_s22 = smov 120   ;;  %vm807_vm3 = vcmask 1039360   ;;  %vm866_vm4 = vcmask 1043456   ;;  %vm815_vm5 = vcmask 1031168   ;;  %vm825_vm6 = vcmask 982016  }
  0x50   : > { %1151 = vmatpush3.bf16.msra.mxu0 %v1249_v8  ;;  %623 = vperm.xlu0 %1246, %v620_v12   ;;  %p535_p11 = scmp.lt.s32.totalorder %s1456_s29, 1  ;;  %vm838_vm7 = vcmask 965632   ;;  %vm633_vm8 = vcmask 31744   ;;  %vm846_vm9 = vcmask 916480   ;;  %vm856_vm10 = vcmask 908288   ;;  %p1737_p0 = scmp.ne.s32.totalorder %s1727_s19, 0 }
  0x51   : > { %1152 = vmatprep.subr.bf16.mxu0 %v1348_v5  ;;  %739 = vrot.lane.b32.xlu1 %v1126_v13, %s1352_s21  ;;  %vm864_vm11 = vcmask 900096   ;;  %vm919_vm12 = vcmask 72704   ;;  %vm929_vm13 = vcmask 588800  }
  0x54   : > { %1153 = vmatpush3.bf16.msra.mxu0 %v571_v14  ;;  %726 = vrot.lane.b32.xlu0 %v1125_v15, %s1353_s20  ;;  %s1115_s20 = sshll.u32 %s1530_s18, 3 }
  0x55   : > { %1158 = vmatprep.subr.bf16.mxu0 %v1348_v5  ;;  %753 = vrot.lane.b32.xlu1 %v1127_v16, %s1354_s30 }
  0x57   : > { %1155 = vmatmul.mubr.msk.bf16.vlgmr.msra.gmra.mrb[0].mxu0 %vm565_vm2, %v549_v17 }
  0x58   : > { %1160 = vmatprep.mubr.msk.bf16.mxu0 %vm1349_vm0, %v1348_v5  ;;  %779 = vrot.lane.b32.xlu0 %v1129_v18, %s1355_s14  ;;  %s1589_s14 = scalar_select %p535_p11, %s1456_s29, 1 }
  0x59   : > { %766 = vrot.lane.b32.xlu1 %v1128_v19, %s1356_s17 }
  0x5a   : > { %s1116_s17 = sshll.u32 %s1589_s14, 2 }
  0x5b   : > { %s538_s30 = scalar_lea.vmem %s1704_s4, %s1116_s17  ;;  %s1361_s17 = smov 112  }
  0x5c   : > { %792 = vrot.lane.b32.xlu0 %v1130_v20, %s1357_s15  ;;  %v628_v40 = vld [vmem:[%s538_s30] sm:$0xf]  ;;  %s1133_s30 = sshll.u32 %s1456_s29, 7  ;;  %s1364_s29 = smov [#allocation6]  }
  0x5d   : > { %700 = vrot.lane.b32.xlu1 %v1123_v21, %s1358_s24  ;;  %v629_v45 = vunpack.c.l.bf16 %v628_v40  ;;  %v632_v40 = vld [vmem:[%s1706_s6] sm:$0xf] }
  0xbf   : > { %v714_v22 = vpop.permute.xlu1 %713 }
  0xc0   : > { %v716_v30 = vmul.f32 0.0, %v714_v22 }
  0xc2   : > { %v718_v32 = vpack.c.bf16 %v716_v30, %v716_v30 }
  0xc3   : > { %v740_v23 = vpop.permute.xlu1 %739 }
  0xc4   : > { %v742_v34 = vmul.f32 0.0, %v740_v23  ;;  %v801_v36 = vrot.slane %v718_v32, 4 }
  0xc6   : > { %v744_v37 = vpack.c.bf16 %v742_v34, %v742_v34 }
  0xc7   : > { %v754_v24 = vpop.permute.xlu1 %753 }
  0xc8   : > { %v757_v25 = vmul.f32 0.0, %v754_v24  ;;  %v819_v38 = vrot.slane %v744_v37, 4 }
  0xca   : > { %v759_v26 = vpack.c.bf16 %v757_v25, %v757_v25 }
  0xcb   : > { %v617_v27 = vpop.permute.xlu0 %616  ;;  %v767_v49 = vpop.permute.xlu1 %766 }
  0xcc   : > { %v833_v28 = vrot.slane %v759_v26, 4  ;;  %v770_v50 = vmul.f32 0.0, %v767_v49 }
  0xce   : > { %836 = vrot.lane.b32.xlu1 %v833_v28, %s1359_s23  ;;  %v772_v57 = vpack.c.bf16 %v770_v50, %v770_v50 }
  0xcf   : > { %v624_v29 = vpop.permute.xlu0 %623  ;;  %v701_v17 = vpop.permute.xlu1 %700 }
  0xd3   : > { %v727_v31 = vpop.permute.xlu0 %726 }
  0xd4   : > { %v729_v33 = vmul.f32 0.0, %v727_v31 }
  0xd6   : > { %v731_v35 = vpack.c.bf16 %v729_v33, %v729_v33 }
  0xd7   : > { %v780_v51 = vpop.permute.xlu0 %779 }
  0xd8   : > { %811 = vrot.lane.b32.xlu0 %v731_v35, %s1360_s16  ;;  %v783_v56 = vmul.f32 0.0, %v780_v51 }
  0xda   : > { %v785_v62 = vpack.c.bf16 %v783_v56, %v783_v56  ;;  %v687_v56 = vld [vmem:[%s1708_s8] sm:$0xff] }
  0xdb   : > { %v793_v3 = vpop.permute.xlu0 %792 }
  0xdc   : > { %803 = vrot.lane.b32.xlu0 %v801_v36, %s1352_s21  ;;  %v851_v2 = vrot.slane %v785_v62, 4  ;;  %v796_v7 = vmul.f32 0.0, %v793_v3 }
  0xde   : > { %v798_v11 = vpack.c.bf16 %v796_v7, %v796_v7 }
  0xe0   : > { %821 = vrot.lane.b32.xlu0 %v819_v38, %s1736_s22 }
 0x12a   : > { %v607_v39 = vpop.f32.mrb[0].mxu0 }
 0x12b   : > { %v619_v41 = vmul.f32 %v617_v27, %v607_v39  ;;  %v1156_v42 = vpop.f32.mrb[1].mxu0 }
 0x12c   : > { %v610_v43 = vpop.f32.mrb[2].mxu0 }
 0x12d   : > { %v626_v44 = vadd.f32 %v624_v29, %v619_v41  ;;  %v1157_v46 = vpop.f32.mrb[3].mxu0 }
 0x12f   : > { %v627_v47 = vmax.f32 %v626_v44, 0.0 }
 0x131   : > { %v630_v48 = vmul.f32 %v629_v45, %v627_v47 }
 0x133   : > { %v746_v52 = vpack.c.bf16 %v630_v48, %v630_v48  ;;  %v730_v53 = vmul.f32 %v727_v31, %v630_v48  ;;  %v717_v54 = vmul.f32 %v714_v22, %v630_v48  ;;  %v756_v55 = vmul.f32 %v754_v24, %v630_v48 }
 0x134   : > { %v743_v60 = vmul.f32 %v740_v23, %v630_v48  ;;  %v769_v4 = vmul.f32 %v767_v49, %v630_v48  ;;  %v782_v6 = vmul.f32 %v780_v51, %v630_v48  ;;  %v795_v13 = vmul.f32 %v793_v3, %v630_v48 }
 0x135   : > { %828 = vrot.lane.b32.xlu0 %v746_v52, %s1358_s24  ;;  %v732_v58 = vpack.c.bf16 %v730_v53, %v730_v53  ;;  %v719_v59 = vpack.c.bf16 %v717_v54, %v717_v54  ;;  %v758_v61 = vpack.c.bf16 %v756_v55, %v756_v55  ;;  %s1362_s24 = smov 111   ;;  %v704_v21 = vmul.f32 %v701_v17, %v630_v48  ;;  %v976_v53 = vld [vmem:[%s1711_s11] sm:$0xff] }
 0x136   : > { %v745_v0 = vpack.c.bf16 %v743_v60, %v743_v60  ;;  %v771_v9 = vpack.c.bf16 %v769_v4, %v769_v4  ;;  %v784_v10 = vpack.c.bf16 %v782_v6, %v782_v6  ;;  %v797_v14 = vpack.c.bf16 %v795_v13, %v795_v13  ;;  %v983_v54 = vld [vmem:[%s1712_s12] sm:$0xff] }
 0x137   : > { %813 = vrot.lane.b32.xlu1 %v732_v58, %s1360_s16  ;;  %v802_v63 = vrot.slane %v719_v59, 4  ;;  %v832_v1 = vrot.slane %v758_v61, 4  ;;  %v703_v22 = vmul.f32 0.0, %v701_v17  ;;  %v706_v25 = vpack.c.bf16 %v704_v21, %v704_v21  ;;  %v680_v55 = vld [vmem:[%s1707_s7] sm:$0xff]  ;;  %s1656_s16 = scalar_lea.hbm %s1713_s13, %s1133_s30 }
 0x138   : > { %v820_v8 = vrot.slane %v745_v0, 4  ;;  %v850_v12 = vrot.slane %v784_v10, 4  ;;  %v890_v10 = vld [vmem:[%s1710_s10] sm:$0xf] }
 0x139   : > { %844 = vrot.lane.b32.xlu0 %v772_v57, %s1361_s17  ;;  %v705_v26 = vpack.c.bf16 %v703_v22, %v703_v22 }
 0x13b   : > { %805 = vrot.lane.b32.xlu1 %v802_v63, %s1352_s21  ;;  %s1363_s21 = smov 110  }
 0x13d   : > { %834 = vrot.lane.b32.xlu0 %v832_v1, %s1359_s23  ;;  %s1117_s23 = sshll.u32 %s1589_s14, 1 }
 0x13e   : > { %s542_s25 = scalar_lea.vmem %s1705_s5, %s1117_s23 }
 0x13f   : > { %823 = vrot.lane.b32.xlu1 %v820_v8, %s1736_s22  ;;  %v631_v32 = vld [vmem:[%s542_s25] sm:$0x3]  ;;  %s994_s22 = scalar_lea.sflag [#allocation5], %s1530_s18 }
 0x140   : > { %v837_v19 = vpop.permute.xlu1 %836  ;;  %v638_v34 = vsel %vm569_vm1, %v631_v32, 0 }
 0x141   : > { %854 = vrot.lane.b32.xlu0 %v851_v2, %s1362_s24  ;;  %1159 = vmatpush3.bf16.msra.mxu0 %v638_v34 }
 0x143   : > { %842 = vrot.lane.b32.xlu1 %v771_v9, %s1361_s17  ;;  %s534_s17 = scalar_lea.vmem [#allocation6], %s1115_s20 }
 0x144   : > { %1161 = vmatmul.mubr.msk.bf16.vlgmr.msra.gmra.mrb[4].mxu0 %vm633_vm8, %v632_v40 }
 0x145   : > { %862 = vrot.lane.b32.xlu0 %v798_v11, %s1363_s21 }
 0x147   : > { %852 = vrot.lane.b32.xlu1 %v850_v12, %s1362_s24  ;;  %s1007_s24 = sshll.u32 %s534_s17, 4  ;;  %s1658_s24 = int_to_ptr.vmem [resolvable:$true] %s1007_s24 }
 0x148   : > { %s1279_s25 = scalar_lea.vmem %s1658_s24, 128 }
 0x149   : > { %p1280_p12 = scmp.ne.s32.totalorder %s1658_s24, %s1279_s25 }
 0x14a   : > { %v812_v15 = vpop.permute.xlu0 %811 }
 0x14b   : > { %860 = vrot.lane.b32.xlu1 %v797_v14, %s1363_s21  ;;  %p1281_p2 = pnand %p1280_p12, %p1737_p0 }
 0x14d   : > { %p1282_p4 = pneg %p1281_p2 }
 0x14e   : > { %v804_v16 = vpop.permute.xlu0 %803 }
 0x152   : > { %v822_v18 = vpop.permute.xlu0 %821 }
 0x1a7   : > { %v829_v20 = vpop.permute.xlu0 %828 }
 0x1a9   : > { %v814_v23 = vpop.permute.xlu1 %813 }
 0x1aa   : > { %v816_v35 = vsel %vm815_vm5, %v812_v15, %v814_v23 }
 0x1ab   : > { %v845_v24 = vpop.permute.xlu0 %844 }
 0x1ad   : > { %v806_v27 = vpop.permute.xlu1 %805 }
 0x1ae   : > { %v808_v28 = vsel %vm807_vm3, %v804_v16, %v806_v27  ;;  %v872_v29 = vsel %vm866_vm4, %v706_v25, %v806_v27 }
 0x1af   : > { %901 = vrot.lane.b32.xlu0 %v872_v29, %s1357_s15  ;;  %v869_v30 = vsel %vm866_vm4, %v705_v26, %v808_v28  ;;  %v835_v31 = vpop.permute.xlu0 %834 }
 0x1b0   : > { %899 = vrot.lane.b32.xlu1 %v869_v30, %s1357_s15  ;;  %v839_v38 = vsel %vm838_vm7, %v835_v31, %v837_v19  ;;  %v881_v44 = vsel %vm866_vm4, %v829_v20, %v835_v31 }
 0x1b1   : > { %v824_v33 = vpop.permute.xlu1 %823  ;;  %v883_v43 = vsel %vm866_vm4, %v829_v20, %v839_v38 }
 0x1b2   : > { %v826_v36 = vsel %vm825_vm6, %v822_v18, %v824_v33  ;;  %v878_v37 = vsel %vm866_vm4, %v814_v23, %v824_v33 }
 0x1b3   : > { %905 = vrot.lane.b32.xlu0 %v878_v37, %s1357_s15  ;;  %v875_v39 = vsel %vm866_vm4, %v816_v35, %v826_v36  ;;  %v855_v42 = vpop.permute.xlu0 %854 }
 0x1b4   : > { %903 = vrot.lane.b32.xlu1 %v875_v39, %s1357_s15 }
 0x1b5   : > { %v843_v41 = vpop.permute.xlu1 %842 }
 0x1b6   : > { %v847_v46 = vsel %vm846_vm9, %v843_v41, %v845_v24 }
 0x1b7   : > { %909 = vrot.lane.b32.xlu0 %v883_v43, %s1357_s15  ;;  %v863_v50 = vpop.permute.xlu0 %862 }
 0x1b8   : > { %907 = vrot.lane.b32.xlu1 %v881_v44, %s1357_s15 }
 0x1b9   : > { %v853_v45 = vpop.permute.xlu1 %852 }
 0x1ba   : > { %v857_v47 = vsel %vm856_vm10, %v853_v45, %v855_v42  ;;  %v886_v48 = vsel %vm866_vm4, %v843_v41, %v853_v45 }
 0x1bb   : > { %v889_v49 = vsel %vm866_vm4, %v847_v46, %v857_v47 }
 0x1bc   : > { %911 = vrot.lane.b32.xlu1 %v886_v48, %s1357_s15  ;;  %913 = vrot.lane.b32.xlu0 %v889_v49, %s1357_s15 }
 0x1bd   : > { %v861_v51 = vpop.permute.xlu1 %860 }
 0x1be   : > { %v865_v52 = vsel %vm864_vm11, %v861_v51, %v863_v50 }
 0x1c0   : > { %915 = vrot.lane.b32.xlu1 %v861_v51, %s1357_s15  ;;  %917 = vrot.lane.b32.xlu0 %v865_v52, %s1357_s15  ;;  %s1283_s15 = sshll.u32 %s1364_s29, 4  ;;  %s1284_s15 = int_to_ptr.vmem [resolvable:$false] %s1283_s15 }
 0x1c1   : > { %s1285_s14 = scalar_lea.vmem %s1284_s15, 256  ;;  %p1286_p7 = scmp.lt.s32.totalorder %s1658_s24, %s1284_s15 }
 0x1c2   : > { %p1287_p8 = scmp.lt.s32.totalorder %s1285_s14, %s1279_s25 }
 0x1c4   : > { %979 = vperm.xlu0 %1246, %v976_v53   ;;  %683 = vperm.xlu1 %1247, %v680_v55   ;;  %p1288_p9 = por %p1287_p8, %p1286_p7 }
 0x1c6   : > { %p1289_p13 = pnand %p1288_p9, %p1282_p4 }
 0x1c8   : > { %986 = vperm.xlu0 %1246, %v983_v54   ;;  %690 = vperm.xlu1 %1247, %v687_v56  }
 0x217   : > { %v674_v11 = vpop.f32.mrb[4].mxu0 }
 0x218   : > { %v1162_v12 = vpop.f32.mrb[5].mxu0 }
 0x219   : > { %v677_v13 = vpop.f32.mrb[6].mxu0 }
 0x21a   : > { %v1163_v14 = vpop.f32.mrb[7].mxu0 }
 0x221   : > { %v902_v57 = vpop.permute.xlu0 %901 }
 0x222   : > { %v900_v58 = vpop.permute.xlu1 %899 }
 0x223   : > { %v920_v59 = vsel %vm919_vm12, %v900_v58, %v902_v57 }
 0x224   : > { %1165 = vmatpush3.bf16.msra.mxu1 %v920_v59 }
 0x225   : > { %v906_v60 = vpop.permute.xlu0 %905  ;;  %1166 = vmatprep.subr.bf16.mxu1 %v1348_v5 }
 0x226   : > { %v904_v61 = vpop.permute.xlu1 %903 }
 0x227   : > { %v921_v62 = vsel %vm919_vm12, %v904_v61, %v906_v60 }
 0x228   : > { %1167 = vmatpush3.bf16.msra.mxu1 %v921_v62 }
 0x229   : > { %v910_v63 = vpop.permute.xlu0 %909  ;;  %1168 = vmatprep.subr.bf16.mxu1 %v1348_v5 }
 0x22a   : > { %v908_v0 = vpop.permute.xlu1 %907 }
 0x22b   : > { %v922_v1 = vsel %vm919_vm12, %v908_v0, %v910_v63 }
 0x22c   : > { %1169 = vmatpush3.bf16.msra.mxu1 %v922_v1 }
 0x22d   : > { %1170 = vmatprep.subr.bf16.mxu1 %v1348_v5 }
 0x22e   : > { %v912_v2 = vpop.permute.xlu1 %911  ;;  %v914_v3 = vpop.permute.xlu0 %913 }
 0x22f   : > { %v923_v4 = vsel %vm919_vm12, %v912_v2, %v914_v3 }
 0x230   : > { %1171 = vmatpush3.bf16.msra.mxu1 %v923_v4 }
 0x231   : > { %1172 = vmatprep.subr.bf16.mxu1 %v1348_v5 }
 0x232   : > { %v916_v6 = vpop.permute.xlu1 %915  ;;  %v918_v7 = vpop.permute.xlu0 %917 }
 0x233   : > { %v924_v8 = vsel %vm919_vm12, %v916_v6, %v918_v7 }
 0x234   : > { %v934_v9 = vsel %vm866_vm4, %v924_v8, 0 }
 0x235   : > { %1173 = vmatpush3.bf16.msra.mxu1 %v934_v9 }
 0x238   : > { %1175 = vmatmul.mubr.msk.bf16.vlgmr.msra.gmra.mrb[0].mxu1 %vm929_vm13, %v890_v10 }
 0x243   : > { %v684_v15 = vpop.permute.xlu1 %683  ;;  %v980_v5 = vpop.permute.xlu0 %979 }
 0x244   : > { %v686_v16 = vmul.f32 %v684_v15, %v674_v11 }
 0x247   : > { %v691_v17 = vpop.permute.xlu1 %690  ;;  %v987_v21 = vpop.permute.xlu0 %986 }
 0x248   : > { %v693_v23 = vadd.f32 %v691_v17, %v686_v16 }
 0x30b   : > { %v970_v18 = vpop.f32.mrb[0].mxu1 }
 0x30c   : > { %v982_v19 = vmul.f32 %v980_v5, %v970_v18  ;;  %v1176_v20 = vpop.f32.mrb[1].mxu1 }
 0x30d   : > { %v973_v22 = vpop.f32.mrb[2].mxu1 }
 0x30e   : > { %v989_v24 = vadd.f32 %v987_v21, %v982_v19  ;;  %v1177_v25 = vpop.f32.mrb[3].mxu1 }
 0x310   : > { %v990_v26 = vadd.f32 %v989_v24, %v693_v23 }
 0x312   : > { %v991_v27 = vmax.f32 %v990_v26, 0.0 }
 0x314   : > { %992 = vst [vmem:[%s534_s17] sm:$0xff] %v991_v27 }
 0x315   : > { %1292 = shalt.err (!%p1289_p13)
}
 0x316   : > { %s1293_s18 = scalar_lea.hbm %s1656_s16, 128  ;;  %s1297_s17 = scalar_lea.hbm %s1713_s13, 256 }
 0x317   : > { %p1294_p3 = scmp.ne.s32.totalorder %s1656_s16, %s1293_s18  ;;  %p1298_p10 = scmp.lt.u32.totalorder %s1656_s16, %s1713_s13 }
 0x318   : > { %p1299_p11 = scmp.lt.u32.totalorder %s1297_s17, %s1293_s18  ;;  %p1301_p2 = scmp.lt.u32.totalorder %s1293_s18, %s1656_s16 }
 0x319   : > { %p1295_p5 = pnand %p1294_p3, %p1737_p0 }
 0x31a   : > { %p1300_p12 = por %p1299_p11, %p1298_p10 }
 0x31b   : > { %p1296_p6 = pneg %p1295_p5 }
 0x31c   : > { %p1302_p4 = por %p1301_p2, %p1300_p12 }
 0x31e   : > { %p1303_p7 = pnand %p1302_p4, %p1296_p6 }
 0x320   : > { %1306 = shalt.err (!%p1303_p7)
}
 0x321   : > { %1184 = dma.vmem_to_hbm [thread:$0]  (%p1737_p0), %s1658_s24, 128, %s1656_s16, %s994_s22  }
 0x322 PF: > { %s1738_s25 = sld [smem:[#allocation9_spill]]  ;;  %s1739_s29 = sld [smem:[#allocation12_spill]] }
 0x328   : > { %s1019_s15 = sand.u32 1, %s1738_s25   ;;  %p1740_p8 = scmp.ne.s32.totalorder %s1739_s29, 0 }
 0x329   : > { %s1020_s14 = scalar_lea.sflag [#allocation5], %s1019_s15 }
 0x32a   : > { %p1191_p9 = pnand %p1111_p1, %p1740_p8 }
 0x32c   : > { %1328 = dma.done.wait (!%p1191_p9), %s1020_s14, 128  }
 0x32d   : > { %1330 = vsyncadd (!%p1191_p9), %s1020_s14, 4294967168  ;;  %s1741_s28 = sld [smem:[#allocation10_spill]]  ;;  %s1742_s18 = sld [smem:[#allocation11_spill]] }
 0x32e   : > { %s1743_s25 = smov %s1337_s26  ;;  %s1744_s26 = smov %s1341_s27 }
 0x333   : > { %p24_p13 = scmp.ge.s32.totalorder %s1741_s28, 4   ;;  %s1745_s27 = smov %s1742_s18 }
 0x335   :  { %26 = sbr.rel (!%p24_p13) target bundleno = 4 (0x4), region = 164 }
 0x33c   :  { %1025 = vsyncpa [#allocation4], 1 }
 0x33d   :  { %1027 = vsyncpa [#allocation4 + $0x1], 1 }
 0x33e   :  { %1028 = vsyncpa [#allocation5], 1 }
 0x33f   :  { %1030 = vsyncpa [#allocation5 + $0x1], 1 }

</bundles_post_ra>
